<compile_context>
chip_gen: v7x
topology: tpu7x:2x2x1
jax: 0.10.0
libtpu: 0.0.40
codegen_flags: <defaults>
</compile_context>

<pallas_src>
import functools

import numpy as np
import jax
import jax.numpy as jnp
from jax.experimental import pallas as pl
from jax.experimental.pallas import tpu as pltpu


_LANE = 128
_MAX_TILE_P = 2048                      # 512-2048 lane tiles pipeline well
_VMEM_TILE_BUDGET = 8 * 1024 * 1024     # bytes for the double-buffered big tiles


def _choose_tile_p(p, repeat):
    """Lane-axis tile: full extent if small, else a VMEM-budgeted multiple of 128."""
    if p <= 512:
        return p  # full-extent block -> no (., 128) divisibility constraint
    # 2 arrays (u in, z out), each double-buffered, f32 -> 2*2*repeat*tile*4 bytes
    max_lanes = _VMEM_TILE_BUDGET // (2 * 2 * max(int(repeat), 1) * 4)
    tile = min(p, _MAX_TILE_P, max(max_lanes, _LANE))
    return max(_LANE, (tile // _LANE) * _LANE)


def _compiler_params(num_grid_dims):
    cp_cls = getattr(pltpu, "CompilerParams", None) or getattr(pltpu, "TPUCompilerParams")
    return cp_cls(dimension_semantics=("parallel",) * num_grid_dims)


def _hc_train_kernel(u_ref, logalpha_ref, z_ref, qz_ref, *,
                     zeta, gamma, beta, inv_beta, gamma_zeta_logratio):
    la = logalpha_ref[...].astype(jnp.float32)                 # (1, tile_p)

    # qz = sigmoid(logalpha - beta * log(-gamma / zeta))  (exact; single row)
    qz_ref[...] = jax.nn.sigmoid(la - beta * gamma_zeta_logratio).astype(qz_ref.dtype)

    u = u_ref[...].astype(jnp.float32)                         # (repeat, tile_p)
    # logit(u) = log(u) - log(1 - u): avoids the exact divide of u/(1-u).
    logit_u = jnp.log(u) - jnp.log(1.0 - u)
    # s = sigmoid((logit(u) + logalpha) / beta); divide folded into a multiply,
    # sigmoid denominator via the approximate EUP reciprocal (free slot).
    x = (logit_u + la) * inv_beta
    s = pl.reciprocal(1.0 + jnp.exp(-x), approx=True)
    z = jnp.clip((zeta - gamma) * s + gamma, 0.0, 1.0)
    z_ref[...] = z.astype(z_ref.dtype)


def _hc_eval_kernel(logalpha_ref, zrow_ref, qz_ref, *,
                    zeta, gamma, beta, gamma_zeta_logratio):
    la = logalpha_ref[...].astype(jnp.float32)                 # (1, tile_p)
    qz_ref[...] = jax.nn.sigmoid(la - beta * gamma_zeta_logratio).astype(qz_ref.dtype)
    zrow = jnp.clip(jax.nn.sigmoid(la) * (zeta - gamma) + gamma, 0.0, 1.0)
    zrow_ref[...] = zrow.astype(zrow_ref.dtype)


def hard_concrete_sample(u, logalpha, *, scale, temperature, training=True):
    """u: (repeat, p) uniform(0,1) samples; logalpha: (p,) parameter.

    Returns (z, qz) with z: (repeat, p), qz: (p,), matching the PyTorch
    module's forward(repeat) semantics (u is sampled outside, deterministically).
    In eval mode u is only used for its shape (never DMA'd).
    """
    repeat, p = u.shape
    assert logalpha.shape == (p,)
    zeta = float(scale)
    gamma = -(zeta - 1.0)
    beta = float(temperature)
    gamma_zeta_logratio = float(np.log(-gamma / zeta))
    logalpha2d = logalpha.reshape(1, p).astype(jnp.float32)

    if training:
        tile_p = _choose_tile_p(p, repeat)
        grid = (pl.cdiv(p, tile_p),)
        kernel = functools.partial(
            _hc_train_kernel, zeta=zeta, gamma=gamma, beta=beta,
            inv_beta=1.0 / beta, gamma_zeta_logratio=gamma_zeta_logratio)
        z, qz = pl.pallas_call(
            kernel,
            out_shape=(
                jax.ShapeDtypeStruct((repeat, p), jnp.float32),
                jax.ShapeDtypeStruct((1, p), jnp.float32),
            ),
            grid=grid,
            in_specs=[
                pl.BlockSpec((repeat, tile_p), lambda j: (0, j)),   # u (cast in-kernel)
                pl.BlockSpec((1, tile_p), lambda j: (0, j)),        # logalpha
            ],
            out_specs=(
                pl.BlockSpec((repeat, tile_p), lambda j: (0, j)),   # z (lane-dense)
                pl.BlockSpec((1, tile_p), lambda j: (0, j)),        # qz
            ),
            compiler_params=_compiler_params(1),
        )(u, logalpha2d)
        return z, qz.reshape(p)

    # Eval: u is never read.  Compute the (1, p) row in an O(p) kernel and
    # broadcast in the wrapper -> no (repeat, p) HBM traffic at all.
    tile_p = _choose_tile_p(p, 1)
    grid = (pl.cdiv(p, tile_p),)
    kernel = functools.partial(
        _hc_eval_kernel, zeta=zeta, gamma=gamma, beta=beta,
        gamma_zeta_logratio=gamma_zeta_logratio)
    z_row, qz = pl.pallas_call(
        kernel,
        out_shape=(
            jax.ShapeDtypeStruct((1, p), jnp.float32),
            jax.ShapeDtypeStruct((1, p), jnp.float32),
        ),
        grid=grid,
        in_specs=[pl.BlockSpec((1, tile_p), lambda j: (0, j))],
        out_specs=(
            pl.BlockSpec((1, tile_p), lambda j: (0, j)),
            pl.BlockSpec((1, tile_p), lambda j: (0, j)),
        ),
        compiler_params=_compiler_params(1),
    )(logalpha2d)
    z = jnp.broadcast_to(z_row, (repeat, p))
    return z, qz.reshape(p)


def hard_concrete_reference(u, logalpha, *, scale, temperature, training=True):
    zeta = float(scale)
    gamma = -(zeta - 1.0)
    beta = float(temperature)
    gamma_zeta_logratio = float(np.log(-gamma / zeta))
    qz = jax.nn.sigmoid(logalpha - beta * gamma_zeta_logratio)
    if training:
        s = jax.nn.sigmoid((jnp.log(u / (1.0 - u)) + logalpha[None, :]) / beta)
        z = jnp.clip((zeta - gamma) * s + gamma, 0.0, 1.0)
    else:
        z = jnp.clip(jax.nn.sigmoid(logalpha) * (zeta - gamma) + gamma, 0.0, 1.0)
        z = jnp.broadcast_to(z[None, :], u.shape)
    return z, qz


if __name__ == "__main__":
    scale = 1.1            # zeta
    temperature = 2.0 / 3.0
    init = float(np.log(0.1 / 0.9))   # same init as the PyTorch module

    key = jax.random.PRNGKey(0)

    # (repeat, p) configs: multi-tile grid, partial last tile, and full-extent block.
    configs = [(8, 2560), (8, 1024), (4, 384)]
    for repeat, p in configs:
        key, ku, ka = jax.random.split(key, 3)
        logalpha = init * jnp.ones((p,), dtype=jnp.float32) \
            + 0.1 * jax.random.normal(ka, (p,), dtype=jnp.float32)
        # Deterministic "Uniform(0,1)" samples (replaces torch Uniform.sample),
        # clamped away from {0, 1} exactly as any sane caller must.
        u = jax.random.uniform(ku, (repeat, p), dtype=jnp.float32,
                               minval=1e-6, maxval=1.0 - 1e-6)

        for training in (True, False):
            z, qz = hard_concrete_sample(u, logalpha, scale=scale,
                                         temperature=temperature, training=training)
            z = jax.block_until_ready(z)
            qz = jax.block_until_ready(qz)
            z_ref, qz_ref = hard_concrete_reference(
                u, logalpha, scale=scale, temperature=temperature, training=training)
            # Training z uses an approximate EUP reciprocal inside sigmoid -> looser tol.
            z_tol = 2e-3 if training else 1e-5
            np.testing.assert_allclose(np.asarray(z), np.asarray(z_ref),
                                       rtol=z_tol, atol=z_tol)
            np.testing.assert_allclose(np.asarray(qz), np.asarray(qz_ref),
                                       rtol=1e-5, atol=1e-5)

    print("KERNEL_OK")
</pallas_src>

<mosaic_0001>
module attributes {stable_mosaic.version = 11 : i64} {
  func.func @_hc_train_kernel(%arg0: i32, %arg1: memref<8x2048xf32, #tpu.memory_space<vmem>>, %arg2: memref<1x2048xf32, #tpu.memory_space<vmem>>, %arg3: memref<8x2048xf32, #tpu.memory_space<vmem>>, %arg4: memref<1x2048xf32, #tpu.memory_space<vmem>>) attributes {dimension_semantics = [#tpu.dimension_semantics<parallel>], iteration_bounds = array<i64: 2>, scalar_prefetch = 0 : i64, scratch_operands = 0 : i64, tpu.core_type = #tpu.core_type<tc>, window_params = [{transform_indices = @transform_0, window_bounds = array<i64: 8, 2048>}, {transform_indices = @transform_1, window_bounds = array<i64: 1, 2048>}, {transform_indices = @transform_2, window_bounds = array<i64: 8, 2048>}, {transform_indices = @transform_3, window_bounds = array<i64: 1, 2048>}]} {
    %c0 = arith.constant 0 : index
    %c0_0 = arith.constant 0 : index
    %0 = vector.load %arg2[%c0, %c0_0] : memref<1x2048xf32, #tpu.memory_space<vmem>>, vector<1x2048xf32>
    %cst = arith.constant -1.59859681 : f32
    %1 = vector.broadcast %cst : f32 to vector<1x2048xf32>
    %2 = arith.subf %0, %1 : vector<1x2048xf32>
    %3 = arith.negf %2 : vector<1x2048xf32>
    %4 = math.exp %3 : vector<1x2048xf32>
    %cst_1 = arith.constant 1.000000e+00 : f32
    %5 = vector.broadcast %cst_1 : f32 to vector<1x2048xf32>
    %6 = arith.addf %5, %4 : vector<1x2048xf32>
    %7 = arith.divf %5, %6 : vector<1x2048xf32>
    %c0_2 = arith.constant 0 : index
    %c0_3 = arith.constant 0 : index
    %8 = vector.load %arg4[%c0_2, %c0_3] : memref<1x2048xf32, #tpu.memory_space<vmem>>, vector<1x2048xf32>
    tpu.vector_store %arg4[%c0_2, %c0_3], %7 {strides = array<i32>} : memref<1x2048xf32, #tpu.memory_space<vmem>>, vector<1x2048xf32>,
    %c0_4 = arith.constant 0 : index
    %c0_5 = arith.constant 0 : index
    %9 = vector.load %arg1[%c0_4, %c0_5] : memref<8x2048xf32, #tpu.memory_space<vmem>>, vector<8x2048xf32>
    %10 = math.log %9 : vector<8x2048xf32>
    %cst_6 = arith.constant 1.000000e+00 : f32
    %11 = vector.broadcast %cst_6 : f32 to vector<8x2048xf32>
    %12 = arith.subf %11, %9 : vector<8x2048xf32>
    %13 = math.log %12 : vector<8x2048xf32>
    %14 = arith.subf %10, %13 : vector<8x2048xf32>
    %15 = vector.broadcast %0 : vector<1x2048xf32> to vector<8x2048xf32>
    %16 = arith.addf %14, %15 : vector<8x2048xf32>
    %cst_7 = arith.constant 1.500000e+00 : f32
    %17 = vector.broadcast %cst_7 : f32 to vector<8x2048xf32>
    %18 = arith.mulf %16, %17 : vector<8x2048xf32>
    %cst_8 = arith.constant 0.000000e+00 : f32
    %19 = vector.broadcast %cst_8 : f32 to vector<8x2048xf32>
    %20 = arith.subf %19, %18 : vector<8x2048xf32>
    %21 = math.exp %20 : vector<8x2048xf32>
    %cst_9 = arith.constant 1.000000e+00 : f32
    %22 = vector.broadcast %cst_9 : f32 to vector<8x2048xf32>
    %23 = arith.addf %22, %21 : vector<8x2048xf32>
    %24 = tpu.reciprocal %23 {approx = true} : vector<8x2048xf32> -> vector<8x2048xf32>
    %cst_10 = arith.constant 1.200000e+00 : f32
    %25 = vector.broadcast %cst_10 : f32 to vector<8x2048xf32>
    %26 = arith.mulf %25, %24 : vector<8x2048xf32>
    %cst_11 = arith.constant -1.000000e-01 : f32
    %27 = vector.broadcast %cst_11 : f32 to vector<8x2048xf32>
    %28 = arith.addf %26, %27 : vector<8x2048xf32>
    %cst_12 = arith.constant 0.000000e+00 : f32
    %cst_13 = arith.constant 1.000000e+00 : f32
    %29 = vector.broadcast %cst_12 : f32 to vector<8x2048xf32>
    %30 = arith.maximumf %29, %28 : vector<8x2048xf32>
    %31 = vector.broadcast %cst_13 : f32 to vector<8x2048xf32>
    %32 = arith.minimumf %31, %30 : vector<8x2048xf32>
    %c0_14 = arith.constant 0 : index
    %c0_15 = arith.constant 0 : index
    %33 = vector.load %arg3[%c0_14, %c0_15] : memref<8x2048xf32, #tpu.memory_space<vmem>>, vector<8x2048xf32>
    tpu.vector_store %arg3[%c0_14, %c0_15], %32 {strides = array<i32>} : memref<8x2048xf32, #tpu.memory_space<vmem>>, vector<8x2048xf32>,
    return
  }
  func.func @transform_0(%arg0: i32) -> (i32, i32) {
    %c0_i32 = arith.constant 0 : i32
    %c0_i32_0 = arith.constant 0 : i32
    return %c0_i32, %arg0 : i32, i32
  }
  func.func @transform_1(%arg0: i32) -> (i32, i32) {
    %c0_i32 = arith.constant 0 : i32
    %c0_i32_0 = arith.constant 0 : i32
    return %c0_i32, %arg0 : i32, i32
  }
  func.func @transform_2(%arg0: i32) -> (i32, i32) {
    %c0_i32 = arith.constant 0 : i32
    %c0_i32_0 = arith.constant 0 : i32
    return %c0_i32, %arg0 : i32, i32
  }
  func.func @transform_3(%arg0: i32) -> (i32, i32) {
    %c0_i32 = arith.constant 0 : i32
    %c0_i32_0 = arith.constant 0 : i32
    return %c0_i32, %arg0 : i32, i32
  }
}

</mosaic_0001>

<bundles_post_ra>
// kernel: tpu_custom_call.1
= control target key start
LH: loop header
LB: loop body
LE: loop exit
PB: predicated region body
PF: predicated region fallthrough
CT: control target
= control target key end

     0   :  { %9 = vsyncpa [#allocation3], 0  ;;  %s1618_s0 = inlined_call_operand.hbm [shape: f32[8,2560], index: 0, kind: input, shape index: {}]   ;;  %s1619_s1 = inlined_call_operand.hbm [shape: f32[1,2560], index: 1, kind: input, shape index: {}]   ;;  %s1620_s2 = inlined_call_operand.hbm [shape: f32[8,2560], index: 2, kind: output, shape index: {0}]   ;;  %s1621_s3 = inlined_call_operand.hbm [shape: f32[1,2560], index: 3, kind: output, shape index: {1}]  }
   0x1   :  { %11 = vsyncpa [#allocation3 + $0x1], 0 }
   0x2   :  { %12 = vsyncpa [#allocation6], 0 }
   0x3   :  { %14 = vsyncpa [#allocation6 + $0x1], 0 }
   0x4   :  { %15 = vsyncpa [#allocation4], 0 }
   0x5   :  { %17 = vsyncpa [#allocation4 + $0x1], 0 }
   0x6   :  { %18 = vsyncpa [#allocation9], 0 }
   0x7   :  { %20 = vsyncpa [#allocation9 + $0x1], 0  ;;  %s1247_s12 = smov 0   ;;  %s1249_s13 = smov 0  }
   0x8   :  { %s1251_s14 = smov 0   ;;  %s1253_s15 = smov 0  }
   0x9 LB: > { %s1268_s16 = sadd.s32 4294967295, %s1221_s15   ;;  %s841_s17 = sadd.s32 4294967294, %s1221_s15   ;;  %s1221_s15 = sphi %s1253_s15, %s1638_s15   ;;  %s1217_s14 = sphi %s1251_s14, %s1637_s14   ;;  %s1213_s13 = sphi %s1249_s13, %s1636_s13   ;;  %s1209_s12 = sphi %s1247_s12, %s1635_s12  }
   0xa   : > { %s1272_s18 = sadd.s32 1, %s1221_s15   ;;  %s33_s19 = sadd.s32 1, %s1217_s14 }
   0xb   : > { %s30_s20 = ssub.s32 %s1221_s15, %s1272_s18  ;;  %p40_p0 = scmp.ne.s32.totalorder %s1217_s14, %s1213_s13 }
   0xc   : > { %p31_p1 = scmp.eq.s32.totalorder %s30_s20, 0  ;;  %p41_p2 = scmp.eq.s32.totalorder %s1221_s15, 0 }
   0xd   : > { %p46_p3 = scmp.ne.s32.totalorder %s1213_s13, %s1209_s12  ;;  %p47_p4 = scmp.eq.s32.totalorder %s1268_s16, 0 }
   0xe   : > { %s1284_s21 = scalar_select %p31_p1, %s1217_s14, %s33_s19  }
   0xf   : > { %p1286_p5 = por %p41_p2, %p40_p0  ;;  %p1290_p6 = por %p47_p4, %p46_p3 }
  0x10   : > { %p96_p7 = scmp.eq.s32.totalorder %s1268_s16, 1  ;;  %p102_p8 = scmp.eq.s32.totalorder %s841_s17, 1 }
  0x11   : > { %s1625_s22 = scalar_select %p1286_p5, 1, 0 }
  0x12   : > { %s1626_s23 = scalar_select %p1290_p6, 1, 0 }
  0x13   : > { %p1295_p9 = por %p96_p7, %p40_p0  ;;  %p1299_p10 = por %p102_p8, %p46_p3 }
  0x14   : > { %p1622_p11 = scmp.ge.s32.totalorder %s1221_s15, 2 }
  0x15   : > { %s1627_s24 = scalar_select %p1295_p9, 1, 0 }
  0x16   : > { %s1628_s25 = scalar_select %p1299_p10, 1, 0 }
  0x17   : > { %144 = sbr.rel (%p1622_p11) target bundleno = 100 (0x64), region = 16 }
  0x1e   : > { %147 = sbr.rel (!%p1286_p5) target bundleno = 64 (0x40), region = 20  ;;  %s148_s26 = sand.u32 (%p1286_p5), 1, %s1217_s14  }
  0x1f   : > { %s845_s27 = sshll.u32 (%p1286_p5), %s1221_s15, 4  ;;  %s844_s28 = sshll.u32 (%p1286_p5), %s148_s26, 7 }
  0x20   : > { %s154_s29 = ssub.s32 (%p1286_p5), 20, %s845_s27  ;;  %s1313_s5 = scalar_lea.sflag (%p1286_p5), [#allocation3], %s148_s26 }
  0x21   : > { %p155_p12 = scmp.lt.s32.totalorder (%p1286_p5), %s154_s29, 16  ;;  %s152_s6 = scalar_lea.vmem (%p1286_p5), [#allocation2], %s844_s28 }
  0x25   : > { %s1640_s29 = smov (!%p155_p12, %s154_s29), 16 }
  0x26   : > { %s1310_s30 = sshll.u32 %s1640_s29, 7 }
  0x27   : > { %s159_s4 = ssub.s32 2048, %s1310_s30 }
  0x28   : > { %160 = vsyncadd %s1313_s5, %s159_s4  ;;  %p847_p13 = scmp.ne.s32.totalorder %s1310_s30, 0  ;;  %s879_s7 = sshll.u32 %s1221_s15, 11 }
  0x29   : > { %s1321_s10 = scalar_lea.hbm %s1618_s0, %s879_s7  ;;  %s166_s11 = sshll.u32 %s152_s6, 4  ;;  %s167_s11 = int_to_ptr.vmem [resolvable:$true] %s166_s11 }
  0x2a   : > { %s1063_s17 = scalar_lea.hbm %s1321_s10, %s1310_s30  ;;  %s1067_s26 = scalar_lea.hbm %s1618_s0, 2560 }
  0x2b   : > { %p1064_p0 = scmp.ne.s32.totalorder %s1321_s10, %s1063_s17  ;;  %p1068_p3 = scmp.lt.u32.totalorder %s1321_s10, %s1618_s0 }
  0x2c   : > { %p1069_p4 = scmp.lt.u32.totalorder %s1067_s26, %s1063_s17  ;;  %p1071_p8 = scmp.lt.u32.totalorder %s1063_s17, %s1321_s10 }
  0x2d   : > { %p1065_p1 = pnand %p1064_p0, %p847_p13 }
  0x2e   : > { %p1070_p7 = por %p1069_p4, %p1068_p3 }
  0x2f   : > { %p1066_p2 = pneg %p1065_p1 }
  0x30   : > { %p1072_p12 = por %p1071_p8, %p1070_p7 }
  0x32   : > { %p1073_p11 = pnand %p1072_p12, %p1066_p2 }
  0x34   : > { %1076 = shalt.err (!%p1073_p11)
}
  0x35   : > { %s1077_s29 = scalar_lea.vmem %s167_s11, %s1310_s30  ;;  %s1223_s4 = smov [#allocation2]  }
  0x36   : > { %p1078_p10 = scmp.ne.s32.totalorder %s167_s11, %s1077_s29  ;;  %s1081_s6 = sshll.u32 %s1223_s4, 4  ;;  %s1082_s6 = int_to_ptr.vmem [resolvable:$false] %s1081_s6 }
  0x37   : > { %s1083_s7 = scalar_lea.vmem %s1082_s6, 4096  ;;  %p1084_p9 = scmp.lt.s32.totalorder %s167_s11, %s1082_s6 }
  0x38   : > { %p1079_p0 = pnand %p1078_p10, %p847_p13  ;;  %p1085_p6 = scmp.lt.s32.totalorder %s1083_s7, %s1077_s29 }
  0x3a   : > { %p1080_p1 = pneg %p1079_p0  ;;  %p1086_p5 = por %p1085_p6, %p1084_p9 }
  0x3c   : > { %p1087_p3 = pnand %p1086_p5, %p1080_p1 }
  0x3e   : > { %1090 = shalt.err (!%p1087_p3)
}
  0x3f   : > { %169 = dma.hbm_to_vmem [thread:$0]  (%p847_p13), %s1321_s10, %s1310_s30, %s167_s11, %s1313_s5  }
  0x40 PF: > { %p1629_p11 = scmp.ne.s32.totalorder %s1625_s22, 0 }
  0x41   : > { %s173_s8 = sand.u32 (%p1629_p11), 1, %s1217_s14   ;;  %s852_s9 = sshll.u32 (%p1629_p11), %s1221_s15, 4 }
  0x42   : > { %172 = sbr.rel (!%p1629_p11) target bundleno = 100 (0x64), region = 24  ;;  %s851_s17 = sshll.u32 (%p1629_p11), %s173_s8, 4 }
  0x43   : > { %s179_s19 = ssub.s32 (%p1629_p11), 20, %s852_s9  ;;  %s1351_s27 = scalar_lea.sflag (%p1629_p11), [#allocation6], %s173_s8 }
  0x44   : > { %p180_p10 = scmp.lt.s32.totalorder (%p1629_p11), %s179_s19, 16  ;;  %s177_s30 = scalar_lea.vmem (%p1629_p11), [#allocation5], %s851_s17 }
  0x49   : > { %s1642_s19 = smov (!%p180_p10, %s179_s19), 16 }
  0x4a   : > { %s1348_s20 = sshll.u32 %s1642_s19, 4 }
  0x4b   : > { %s184_s26 = ssub.s32 256, %s1348_s20 }
  0x4c   : > { %185 = vsyncadd %s1351_s27, %s184_s26  ;;  %p854_p5 = scmp.ne.s32.totalorder %s1348_s20, 0  ;;  %s880_s22 = sshll.u32 %s1221_s15, 8 }
  0x4d   : > { %s1359_s11 = scalar_lea.hbm %s1619_s1, %s880_s22  ;;  %s190_s28 = sshll.u32 %s177_s30, 4  ;;  %s191_s28 = int_to_ptr.vmem [resolvable:$true] %s190_s28 }
  0x4e   : > { %s1091_s29 = scalar_lea.hbm %s1359_s11, %s1348_s20  ;;  %s1095_s7 = scalar_lea.hbm %s1619_s1, 320 }
  0x4f   : > { %p1092_p6 = scmp.ne.s32.totalorder %s1359_s11, %s1091_s29  ;;  %p1096_p2 = scmp.lt.u32.totalorder %s1359_s11, %s1619_s1 }
  0x50   : > { %p1097_p4 = scmp.lt.u32.totalorder %s1095_s7, %s1091_s29  ;;  %p1099_p8 = scmp.lt.u32.totalorder %s1091_s29, %s1359_s11 }
  0x51   : > { %p1093_p9 = pnand %p1092_p6, %p854_p5 }
  0x52   : > { %p1098_p7 = por %p1097_p4, %p1096_p2 }
  0x53   : > { %p1094_p13 = pneg %p1093_p9 }
  0x54   : > { %p1100_p12 = por %p1099_p8, %p1098_p7 }
  0x56   : > { %p1101_p0 = pnand %p1100_p12, %p1094_p13 }
  0x58   : > { %1104 = shalt.err (!%p1101_p0)
}
  0x59   : > { %s1105_s17 = scalar_lea.vmem %s191_s28, %s1348_s20  ;;  %s1224_s19 = smov [#allocation5]  }
  0x5a   : > { %p1106_p1 = scmp.ne.s32.totalorder %s191_s28, %s1105_s17  ;;  %s1109_s26 = sshll.u32 %s1224_s19, 4  ;;  %s1110_s26 = int_to_ptr.vmem [resolvable:$false] %s1109_s26 }
  0x5b   : > { %s1111_s30 = scalar_lea.vmem %s1110_s26, 512  ;;  %p1112_p10 = scmp.lt.s32.totalorder %s191_s28, %s1110_s26 }
  0x5c   : > { %p1107_p3 = pnand %p1106_p1, %p854_p5  ;;  %p1113_p6 = scmp.lt.s32.totalorder %s1111_s30, %s1105_s17 }
  0x5e   : > { %p1108_p11 = pneg %p1107_p3  ;;  %p1114_p9 = por %p1113_p6, %p1112_p10 }
  0x60   : > { %p1115_p2 = pnand %p1114_p9, %p1108_p11 }
  0x62   : > { %1118 = shalt.err (!%p1115_p2)
}
  0x63   : > { %193 = dma.hbm_to_vmem [thread:$0]  (%p854_p5), %s1359_s11, %s1348_s20, %s191_s28, %s1351_s27  }
  0x64 PF: > { %p856_p13 = scmp.ge.s32.totalorder %s1221_s15, 1  ;;  %p195_p4 = scmp.lt.s32.totalorder %s1221_s15, 3 }
  0x66   : > { %p196_p7 = pnand %p856_p13, %p195_p4 }
  0x67   : > { %s1385_s22 = sand.u32 (!%p196_p7), 1, %s1213_s13   ;;  %p1630_p5 = scmp.ne.s32.totalorder (!%p196_p7), %s1626_s23, 0 }
  0x68   : > { %199 = sbr.rel (%p196_p7) target bundleno = 297 (0x129), region = 28  ;;  %s857_s5 = sshll.u32 (!%p196_p7), %s1385_s22, 7 }
  0x69   : > { %s202_s10 = scalar_lea.sflag (!%p196_p7), [#allocation3], %s1385_s22  ;;  %s1391_s29 = scalar_lea.vmem (!%p196_p7), [#allocation2], %s857_s5 }
  0x6f   : > { %1192 = dma.done.wait (%p1630_p5), %s202_s10, 2048  }
  0x70   : > { %1194 = vsyncadd (%p1630_p5), %s202_s10, 4294965248  ;;  %s858_s20 = sshll.u32 %s1385_s22, 4  ;;  %s211_s27 = scalar_lea.sflag [#allocation6], %s1385_s22 }
  0x71   : > { %s214_s11 = scalar_lea.vmem [#allocation5], %s858_s20 }
  0x72   : > { %1196 = dma.done.wait (%p1630_p5), %s211_s27, 256  }
  0x73   : > { %1198 = vsyncadd (%p1630_p5), %s211_s27, 4294967040  ;;  %v1405_v0 = vld [vmem:[%s214_s11] sm:$0xff]  ;;  %v1407_v1 = vld [vmem:[%s214_s11 + $0x8] sm:$0xff]  ;;  %v399_v3 = vlaneseq  ;;  %s1470_s23 = scalar_lea.vmem [#allocation8], %s858_s20  ;;  %s1498_s28 = scalar_lea.vmem [#allocation7], %s857_s5 }
  0x74   : > { %v285_v2 = vld [vmem:[%s1391_s29] sm:$0xff]  ;;  %v861_v4 = vadd.f32 1.5985968, %v1405_v0  ;;  %v862_v5 = vadd.f32 1.5985968, %v1407_v1  ;;  %v286_v7 = vld [vmem:[%s1391_s29 + $0x8] sm:$0xff] }
  0x75   : > { %927 = vlog2.f32 %v285_v2  ;;  %v333_v6 = vsub.f32 1.0, %v285_v2  ;;  %v334_v8 = vsub.f32 1.0, %v286_v7  ;;  %v287_v9 = vld [vmem:[%s1391_s29 + $0x10] sm:$0xff]  ;;  %v288_v12 = vld [vmem:[%s1391_s29 + $0x18] sm:$0xff]  ;;  %v1415_v14 = vshrl.u32 %v399_v3, 7  ;;  %v289_v15 = vld [vmem:[%s1391_s29 + $0x20] sm:$0xff] }
  0x76   : > { %929 = vlog2.f32 %v286_v7  ;;  %v863_v10 = vmul.f32 -1.442695, %v861_v4  ;;  %v864_v11 = vmul.f32 -1.442695, %v862_v5  ;;  %v335_v13 = vsub.f32 1.0, %v287_v9  ;;  %v290_v17 = vld [vmem:[%s1391_s29 + $0x28] sm:$0xff] }
  0x77   : > { %931 = vlog2.f32 %v333_v6  ;;  %v336_v16 = vsub.f32 1.0, %v288_v12  ;;  %v337_v18 = vsub.f32 1.0, %v289_v15  ;;  %v401_v19 = vsub.s32 0, %v1415_v14  ;;  %v291_v21 = vld [vmem:[%s1391_s29 + $0x30] sm:$0xff]  ;;  %v292_v37 = vld [vmem:[%s1391_s29 + $0x38] sm:$0xff]  ;;  %v293_v46 = vld [vmem:[%s1391_s29 + $0x40] sm:$0xff] }
  0x78   : > { %933 = vlog2.f32 %v334_v8  ;;  %v405_v20 = vsub.s32 1, %v1415_v14  ;;  %v409_v22 = vsub.s32 2, %v1415_v14  ;;  %v413_v23 = vsub.s32 3, %v1415_v14  ;;  %v294_v63 = vld [vmem:[%s1391_s29 + $0x48] sm:$0xff]  ;;  %s672_s4 = scalar_lea.sflag [#allocation4], %s1385_s22  ;;  %s677_s6 = scalar_lea.sflag [#allocation9], %s1385_s22 }
  0x79   : > { %935 = vpow2.f32 %v863_v10  ;;  %v338_v24 = vsub.f32 1.0, %v290_v17  ;;  %v417_v26 = vsub.s32 4, %v1415_v14  ;;  %v421_v27 = vsub.s32 5, %v1415_v14  ;;  %v295_v10 = vld [vmem:[%s1391_s29 + $0x50] sm:$0xff]  ;;  %p1631_p8 = scmp.ne.s32.totalorder %s1627_s24, 0 }
  0x7a   : > { %937 = vpow2.f32 %v864_v11  ;;  %v425_v28 = vsub.s32 6, %v1415_v14  ;;  %v339_v31 = vsub.f32 1.0, %v291_v21  ;;  %v429_v32 = vsub.s32 7, %v1415_v14  ;;  %s867_s7 = sshll.u32 (%p1631_p8), %s1268_s16, 4 }
  0x7b   : > { %939 = vlog2.f32 %v287_v9  ;;  %v402_v34 = vrot.slane %v1405_v0, %v401_v19  ;;  %v406_v36 = vrot.slane %v1405_v0, %v405_v20  ;;  %v410_v40 = vrot.slane %v1405_v0, %v409_v22  ;;  %s685_s8 = ssub.s32 (%p1631_p8), 20, %s867_s7 }
  0x7c   : > { %941 = vlog2.f32 %v335_v13  ;;  %v414_v41 = vrot.slane %v1405_v0, %v413_v23  ;;  %v1442_v44 = vrot.slane %v1405_v0, %v417_v26  ;;  %v1447_v45 = vrot.slane %v1405_v0, %v421_v27  ;;  %p686_p12 = scmp.lt.s32.totalorder (%p1631_p8), %s685_s8, 16 }
  0x7d   : > { %943 = vlog2.f32 %v288_v12  ;;  %v340_v50 = vsub.f32 1.0, %v292_v37  ;;  %v1453_v54 = vrot.slane %v1405_v0, %v425_v28  ;;  %v341_v58 = vsub.f32 1.0, %v293_v46 }
  0x7e   : > { %945 = vlog2.f32 %v336_v16  ;;  %v1458_v62 = vrot.slane %v1405_v0, %v429_v32  ;;  %v1462_v5 = vrot.slane %v1407_v1, %v401_v19  ;;  %v342_v0 = vsub.f32 1.0, %v294_v63 }
  0x7f   : > { %v928_v25 = vpop.eup %927  ;;  %947 = vlog2.f32 %v289_v15 }
  0x80   : > { %v930_v29 = vpop.eup %929  ;;  %v302_v30 = vmul.f32 0.6931472, %v928_v25  ;;  %949 = vlog2.f32 %v337_v18 }
  0x81   : > { %v932_v33 = vpop.eup %931  ;;  %v304_v35 = vmul.f32 0.6931472, %v930_v29  ;;  %951 = vlog2.f32 %v290_v17 }
  0x82   : > { %v934_v38 = vpop.eup %933  ;;  %v350_v39 = vmul.f32 0.6931472, %v932_v33  ;;  %953 = vlog2.f32 %v338_v24  ;;  %v296_v24 = vld [vmem:[%s1391_s29 + $0x58] sm:$0xff] }
  0x83   : > { %v936_v42 = vpop.eup %935  ;;  %v352_v43 = vmul.f32 0.6931472, %v934_v38  ;;  %955 = vlog2.f32 %v291_v21 }
  0x84   : > { %v938_v47 = vpop.eup %937  ;;  %v277_v48 = vadd.f32 1.0, %v936_v42  ;;  %v381_v49 = vsub.f32 %v302_v30, %v350_v39  ;;  %957 = vlog2.f32 %v339_v31  ;;  %v343_v30 = vsub.f32 1.0, %v295_v10 }
  0x85   : > { %v940_v51 = vpop.eup %939  ;;  %v278_v52 = vadd.f32 1.0, %v938_v47  ;;  %v382_v53 = vsub.f32 %v304_v35, %v352_v43  ;;  %959 = vlog2.f32 %v292_v37 }
  0x86   : > { %v942_v55 = vpop.eup %941  ;;  %961 = vrcp.f32 %v277_v48  ;;  %v479_v56 = vadd.f32 %v402_v34, %v381_v49  ;;  %v306_v57 = vmul.f32 0.6931472, %v940_v51  ;;  %v297_v48 = vld [vmem:[%s1391_s29 + $0x60] sm:$0xff] }
  0x87   : > { %v944_v59 = vpop.eup %943  ;;  %963 = vrcp.f32 %v278_v52  ;;  %v480_v60 = vadd.f32 %v406_v36, %v382_v53  ;;  %v354_v61 = vmul.f32 0.6931472, %v942_v55 }
  0x88   : > { %v946_v2 = vpop.eup %945  ;;  %v495_v3 = vmul.f32 1.5, %v479_v56  ;;  %v308_v4 = vmul.f32 0.6931472, %v944_v59  ;;  %965 = vlog2.f32 %v340_v50  ;;  %v345_v59 = vsub.f32 1.0, %v297_v48 }
  0x89   : > { %v948_v6 = vpop.eup %947  ;;  %v496_v7 = vmul.f32 1.5, %v480_v60  ;;  %v383_v8 = vsub.f32 %v306_v57, %v354_v61  ;;  %v356_v9 = vmul.f32 0.6931472, %v946_v2  ;;  %967 = vlog2.f32 %v293_v46 }
  0x8a   : > { %v950_v11 = vpop.eup %949  ;;  %v511_v12 = vsub.f32 0.0, %v495_v3  ;;  %v310_v13 = vmul.f32 0.6931472, %v948_v6  ;;  %969 = vlog2.f32 %v341_v58 }
  0x8b   : > { %v952_v15 = vpop.eup %951  ;;  %v512_v16 = vsub.f32 0.0, %v496_v7  ;;  %v481_v17 = vadd.f32 %v410_v40, %v383_v8  ;;  %v384_v18 = vsub.f32 %v308_v4, %v356_v9  ;;  %v358_v21 = vmul.f32 0.6931472, %v950_v11 }
  0x8c   : > { %v954_v19 = vpop.eup %953  ;;  %v527_v25 = vmul.f32 1.442695, %v511_v12  ;;  %v312_v29 = vmul.f32 0.6931472, %v952_v15  ;;  %971 = vlog2.f32 %v294_v63  ;;  %v344_v40 = vsub.f32 1.0, %v296_v24 }
  0x8d   : > { %v956_v31 = vpop.eup %955  ;;  %v529_v33 = vmul.f32 1.442695, %v512_v16  ;;  %v497_v34 = vmul.f32 1.5, %v481_v17  ;;  %v482_v35 = vadd.f32 %v414_v41, %v384_v18  ;;  %v385_v36 = vsub.f32 %v310_v13, %v358_v21 }
  0x8e   : > { %v958_v37 = vpop.eup %957  ;;  %973 = vpow2.f32 %v527_v25  ;;  %v360_v38 = vmul.f32 0.6931472, %v954_v19  ;;  %v314_v39 = vmul.f32 0.6931472, %v956_v31 }
  0x8f   : > { %v960_v42 = vpop.eup %959  ;;  %975 = vpow2.f32 %v529_v33  ;;  %v513_v43 = vsub.f32 0.0, %v497_v34  ;;  %v498_v46 = vmul.f32 1.5, %v482_v35  ;;  %v483_v47 = vadd.f32 %v1442_v44, %v385_v36  ;;  %v298_v36 = vld [vmem:[%s1391_s29 + $0x68] sm:$0xff] }
  0x90   : > { %v962_v49 = vpop.eup %961  ;;  %v386_v50 = vsub.f32 %v312_v29, %v360_v38  ;;  %v362_v51 = vmul.f32 0.6931472, %v958_v37  ;;  %v316_v52 = vmul.f32 0.6931472, %v960_v42  ;;  %977 = vlog2.f32 %v342_v0 }
  0x91   : > { %v964_v41 = vpop.eup %963  ;;  %283 = vst [vmem:[%s1470_s23] sm:$0xff] %v962_v49  ;;  %v531_v53 = vmul.f32 1.442695, %v513_v43  ;;  %v514_v55 = vsub.f32 0.0, %v498_v46  ;;  %v499_v56 = vmul.f32 1.5, %v483_v47  ;;  %979 = vlog2.f32 %v295_v10 }
  0x92   : > { %v966_v57 = vpop.eup %965  ;;  %284 = vst [vmem:[%s1470_s23 + $0x8] sm:$0xff] %v964_v41  ;;  %v484_v44 = vadd.f32 %v1447_v45, %v386_v50  ;;  %v387_v58 = vsub.f32 %v314_v39, %v362_v51  ;;  %981 = vlog2.f32 %v343_v30  ;;  %v299_v41 = vld [vmem:[%s1391_s29 + $0x70] sm:$0xff] }
  0x93   : > { %v968_v60 = vpop.eup %967  ;;  %983 = vpow2.f32 %v531_v53  ;;  %v533_v61 = vmul.f32 1.442695, %v514_v55  ;;  %v515_v63 = vsub.f32 0.0, %v499_v56  ;;  %v364_v2 = vmul.f32 0.6931472, %v966_v57 }
  0x94   : > { %v970_v3 = vpop.eup %969  ;;  %v500_v4 = vmul.f32 1.5, %v484_v44  ;;  %v485_v6 = vadd.f32 %v1453_v54, %v387_v58  ;;  %v318_v7 = vmul.f32 0.6931472, %v968_v60  ;;  %985 = vlog2.f32 %v296_v24 }
  0x95   : > { %987 = vpow2.f32 %v533_v61  ;;  %v535_v8 = vmul.f32 1.442695, %v515_v63  ;;  %v388_v9 = vsub.f32 %v316_v52, %v364_v2  ;;  %v366_v10 = vmul.f32 0.6931472, %v970_v3 }
  0x96   : > { %v972_v11 = vpop.eup %971  ;;  %v516_v45 = vsub.f32 0.0, %v500_v4  ;;  %v501_v12 = vmul.f32 1.5, %v485_v6  ;;  %989 = vlog2.f32 %v344_v40  ;;  %v446_v58 = vrot.slane %v1407_v1, %v413_v23 }
  0x97   : > { %991 = vpow2.f32 %v535_v8  ;;  %v486_v13 = vadd.f32 %v1458_v62, %v388_v9  ;;  %v389_v0 = vsub.f32 %v318_v7, %v366_v10  ;;  %v320_v18 = vmul.f32 0.6931472, %v972_v11 }
  0x98   : > { %v974_v15 = vpop.eup %973  ;;  %v537_v16 = vmul.f32 1.442695, %v516_v45  ;;  %v517_v17 = vsub.f32 0.0, %v501_v12  ;;  %993 = vlog2.f32 %v297_v48  ;;  %v438_v62 = vrot.slane %v1407_v1, %v405_v20 }
  0x99   : > { %v976_v54 = vpop.eup %975  ;;  %v559_v21 = vadd.f32 1.0, %v974_v15  ;;  %v502_v24 = vmul.f32 1.5, %v486_v13  ;;  %v487_v19 = vadd.f32 %v1462_v5, %v389_v0  ;;  %995 = vlog2.f32 %v345_v59 }
  0x9a   : > { %v978_v25 = vpop.eup %977  ;;  %v560_v29 = vadd.f32 1.0, %v976_v54  ;;  %997 = vpow2.f32 %v537_v16  ;;  %v539_v30 = vmul.f32 1.442695, %v517_v17  ;;  %v442_v5 = vrot.slane %v1407_v1, %v409_v22  ;;  %v300_v17 = vld [vmem:[%s1391_s29 + $0x78] sm:$0xff] }
  0x9b   : > { %v980_v31 = vpop.eup %979  ;;  %999 = vrcp.f32 %v559_v21  ;;  %v518_v33 = vsub.f32 0.0, %v502_v24  ;;  %v503_v34 = vmul.f32 1.5, %v487_v19  ;;  %v368_v35 = vmul.f32 0.6931472, %v978_v25 }
  0x9c   : > { %v982_v37 = vpop.eup %981  ;;  %1001 = vrcp.f32 %v560_v29  ;;  %v322_v38 = vmul.f32 0.6931472, %v980_v31  ;;  %v346_v48 = vsub.f32 1.0, %v298_v36  ;;  %v347_v63 = vsub.f32 1.0, %v299_v41 }
  0x9d   : > { %v984_v39 = vpop.eup %983  ;;  %1003 = vpow2.f32 %v539_v30  ;;  %v541_v40 = vmul.f32 1.442695, %v518_v33  ;;  %v519_v42 = vsub.f32 0.0, %v503_v34  ;;  %v390_v43 = vsub.f32 %v320_v18, %v368_v35 }
  0x9e   : > { %v986_v20 = vpop.eup %985  ;;  %v561_v46 = vadd.f32 1.0, %v984_v39  ;;  %v370_v47 = vmul.f32 0.6931472, %v982_v37  ;;  %1005 = vlog2.f32 %v298_v36  ;;  %v450_v10 = vrot.slane %v1407_v1, %v417_v26 }
  0x9f   : > { %v988_v49 = vpop.eup %987  ;;  %1007 = vpow2.f32 %v541_v40  ;;  %v543_v50 = vmul.f32 1.442695, %v519_v42  ;;  %v488_v51 = vadd.f32 %v438_v62, %v390_v43  ;;  %v324_v52 = vmul.f32 0.6931472, %v986_v20 }
  0xa0   : > { %v990_v53 = vpop.eup %989  ;;  %1009 = vrcp.f32 %v561_v46  ;;  %v562_v22 = vadd.f32 1.0, %v988_v49  ;;  %v391_v55 = vsub.f32 %v322_v38, %v370_v47  ;;  %v454_v24 = vrot.slane %v1407_v1, %v421_v27 }
  0xa1   : > { %v992_v56 = vpop.eup %991  ;;  %1011 = vpow2.f32 %v543_v50  ;;  %v504_v57 = vmul.f32 1.5, %v488_v51  ;;  %v372_v44 = vmul.f32 0.6931472, %v990_v53  ;;  %v348_v34 = vsub.f32 1.0, %v300_v17 }
  0xa2   : > { %v994_v59 = vpop.eup %993  ;;  %1013 = vrcp.f32 %v562_v22  ;;  %v563_v60 = vadd.f32 1.0, %v992_v56  ;;  %v489_v61 = vadd.f32 %v442_v5, %v391_v55  ;;  %v458_v53 = vrot.slane %v1407_v1, %v425_v28 }
  0xa3   : > { %v996_v2 = vpop.eup %995  ;;  %v520_v3 = vsub.f32 0.0, %v504_v57  ;;  %v392_v4 = vsub.f32 %v324_v52, %v372_v44  ;;  %v326_v6 = vmul.f32 0.6931472, %v994_v59  ;;  %1015 = vlog2.f32 %v346_v48 }
  0xa4   : > { %v998_v7 = vpop.eup %997  ;;  %1017 = vrcp.f32 %v563_v60  ;;  %v505_v8 = vmul.f32 1.5, %v489_v61  ;;  %v374_v9 = vmul.f32 0.6931472, %v996_v2 }
  0xa5   : > { %v1000_v23 = vpop.eup %999  ;;  %v564_v11 = vadd.f32 1.0, %v998_v7  ;;  %v545_v45 = vmul.f32 1.442695, %v520_v3  ;;  %v490_v12 = vadd.f32 %v446_v58, %v392_v4  ;;  %1019 = vlog2.f32 %v299_v41 }
  0xa6   : > { %v1002_v13 = vpop.eup %1001  ;;  %v591_v0 = vmul.f32 1.2, %v1000_v23  ;;  %v521_v15 = vsub.f32 0.0, %v505_v8  ;;  %v393_v16 = vsub.f32 %v326_v6, %v374_v9  ;;  %1021 = vlog2.f32 %v347_v63 }
  0xa7   : > { %v1004_v18 = vpop.eup %1003  ;;  %v592_v54 = vmul.f32 1.2, %v1002_v13  ;;  %1023 = vrcp.f32 %v564_v11  ;;  %v506_v21 = vmul.f32 1.5, %v490_v12 }
  0xa8   : > { %v1006_v26 = vpop.eup %1005  ;;  %v607_v19 = vadd.f32 -0.1, %v591_v0  ;;  %v565_v25 = vadd.f32 1.0, %v1004_v18  ;;  %1025 = vpow2.f32 %v545_v45  ;;  %v547_v29 = vmul.f32 1.442695, %v521_v15 }
  0xa9   : > { %v1008_v30 = vpop.eup %1007  ;;  %v608_v62 = vadd.f32 -0.1, %v592_v54  ;;  %v522_v31 = vsub.f32 0.0, %v506_v21  ;;  %v491_v33 = vadd.f32 %v450_v10, %v393_v16  ;;  %v328_v38 = vmul.f32 0.6931472, %v1006_v26 }
  0xaa   : > { %v1010_v35 = vpop.eup %1009  ;;  %v623_v36 = vmax.f32 %v607_v19, 0.0  ;;  %1027 = vrcp.f32 %v565_v25  ;;  %v566_v37 = vadd.f32 1.0, %v1008_v30 }
  0xab   : > { %v1012_v5 = vpop.eup %1011  ;;  %v624_v39 = vmax.f32 %v608_v62, 0.0  ;;  %v593_v40 = vmul.f32 1.2, %v1010_v35  ;;  %1029 = vpow2.f32 %v547_v29  ;;  %v549_v27 = vmul.f32 1.442695, %v522_v31 }
  0xac   : > { %v1014_v42 = vpop.eup %1013  ;;  %v639_v43 = vmin.f32 %v623_v36, 1.0  ;;  %1031 = vrcp.f32 %v566_v37  ;;  %v567_v20 = vadd.f32 1.0, %v1012_v5  ;;  %v507_v46 = vmul.f32 1.5, %v491_v33 }
  0xad   : > { %v1016_v47 = vpop.eup %1015  ;;  %v640_v48 = vmin.f32 %v624_v39, 1.0  ;;  %v609_v49 = vadd.f32 -0.1, %v593_v40  ;;  %v594_v50 = vmul.f32 1.2, %v1014_v42  ;;  %1033 = vpow2.f32 %v549_v27 }
  0xae   : > { %v1018_v51 = vpop.eup %1017  ;;  %655 = vst [vmem:[%s1498_s28] sm:$0xff] %v639_v43  ;;  %1035 = vrcp.f32 %v567_v20  ;;  %v523_v52 = vsub.f32 0.0, %v507_v46  ;;  %v376_v41 = vmul.f32 0.6931472, %v1016_v47  ;;  %v462_v46 = vrot.slane %v1407_v1, %v429_v32 }
  0xaf   : > { %v1020_v22 = vpop.eup %1019  ;;  %656 = vst [vmem:[%s1498_s28 + $0x8] sm:$0xff] %v640_v48  ;;  %v625_v55 = vmax.f32 %v609_v49, 0.0  ;;  %v610_v56 = vadd.f32 -0.1, %v594_v50  ;;  %v595_v57 = vmul.f32 1.2, %v1018_v51  ;;  %1037 = vlog2.f32 %v300_v17 }
  0xb0   : > { %v1022_v44 = vpop.eup %1021  ;;  %v551_v58 = vmul.f32 1.442695, %v523_v52  ;;  %v394_v59 = vsub.f32 %v328_v38, %v376_v41  ;;  %v330_v60 = vmul.f32 0.6931472, %v1020_v22  ;;  %1039 = vlog2.f32 %v348_v34 }
  0xb1   : > { %v1024_v61 = vpop.eup %1023  ;;  %v641_v63 = vmin.f32 %v625_v55, 1.0  ;;  %v626_v2 = vmax.f32 %v610_v56, 0.0  ;;  %v611_v3 = vadd.f32 -0.1, %v595_v57  ;;  %v378_v4 = vmul.f32 0.6931472, %v1022_v44 }
  0xb2   : > { %v1026_v6 = vpop.eup %1025  ;;  %v596_v28 = vmul.f32 1.2, %v1024_v61  ;;  %1041 = vpow2.f32 %v551_v58  ;;  %v492_v7 = vadd.f32 %v454_v24, %v394_v59 }
  0xb3   : > { %657 = vst [vmem:[%s1498_s28 + $0x10] sm:$0xff] %v641_v63  ;;  %v642_v8 = vmin.f32 %v626_v2, 1.0  ;;  %v627_v9 = vmax.f32 %v611_v3, 0.0  ;;  %v568_v10 = vadd.f32 1.0, %v1026_v6  ;;  %v395_v23 = vsub.f32 %v330_v60, %v378_v4 }
  0xb4   : > { %v1028_v11 = vpop.eup %1027  ;;  %v612_v45 = vadd.f32 -0.1, %v596_v28  ;;  %v508_v12 = vmul.f32 1.5, %v492_v7 }
  0xb5   : > { %v1030_v13 = vpop.eup %1029  ;;  %658 = vst [vmem:[%s1498_s28 + $0x18] sm:$0xff] %v642_v8  ;;  %v643_v0 = vmin.f32 %v627_v9, 1.0  ;;  %v597_v15 = vmul.f32 1.2, %v1028_v11  ;;  %1043 = vrcp.f32 %v568_v10  ;;  %v493_v16 = vadd.f32 %v458_v53, %v395_v23 }
  0xb6   : > { %v1032_v17 = vpop.eup %1031  ;;  %v628_v18 = vmax.f32 %v612_v45, 0.0  ;;  %v569_v54 = vadd.f32 1.0, %v1030_v13  ;;  %v524_v21 = vsub.f32 0.0, %v508_v12 }
  0xb7   : > { %v1034_v24 = vpop.eup %1033  ;;  %659 = vst [vmem:[%s1498_s28 + $0x20] sm:$0xff] %v643_v0  ;;  %v613_v26 = vadd.f32 -0.1, %v597_v15  ;;  %v598_v19 = vmul.f32 1.2, %v1032_v17  ;;  %v509_v25 = vmul.f32 1.5, %v493_v16 }
  0xb8   : > { %v1036_v29 = vpop.eup %1035  ;;  %v644_v30 = vmin.f32 %v628_v18, 1.0  ;;  %1045 = vrcp.f32 %v569_v54  ;;  %v570_v62 = vadd.f32 1.0, %v1034_v24  ;;  %v553_v31 = vmul.f32 1.442695, %v524_v21 }
  0xb9   : > { %v1038_v33 = vpop.eup %1037  ;;  %v629_v34 = vmax.f32 %v613_v26, 0.0  ;;  %v614_v35 = vadd.f32 -0.1, %v598_v19  ;;  %v599_v36 = vmul.f32 1.2, %v1036_v29  ;;  %v525_v37 = vsub.f32 0.0, %v509_v25 }
  0xba   : > { %v1040_v38 = vpop.eup %1039  ;;  %660 = vst [vmem:[%s1498_s28 + $0x28] sm:$0xff] %v644_v30  ;;  %1047 = vrcp.f32 %v570_v62  ;;  %v332_v5 = vmul.f32 0.6931472, %v1038_v33 }
  0xbb   : > { %v645_v39 = vmin.f32 %v629_v34, 1.0  ;;  %v630_v40 = vmax.f32 %v614_v35, 0.0  ;;  %v615_v27 = vadd.f32 -0.1, %v599_v36  ;;  %1049 = vpow2.f32 %v553_v31 }
  0xbc   : > { %v1042_v42 = vpop.eup %1041  ;;  %v555_v43 = vmul.f32 1.442695, %v525_v37  ;;  %v380_v20 = vmul.f32 0.6931472, %v1040_v38 }
  0xbd   : > { %661 = vst [vmem:[%s1498_s28 + $0x30] sm:$0xff] %v645_v39  ;;  %v646_v47 = vmin.f32 %v630_v40, 1.0  ;;  %v631_v48 = vmax.f32 %v615_v27, 0.0  ;;  %v571_v49 = vadd.f32 1.0, %v1042_v42 }
  0xbe   : > { %1051 = vpow2.f32 %v555_v43  ;;  %v396_v50 = vsub.f32 %v332_v5, %v380_v20 }
  0xbf   : > { %v1044_v51 = vpop.eup %1043  ;;  %662 = vst [vmem:[%s1498_s28 + $0x38] sm:$0xff] %v646_v47  ;;  %v647_v52 = vmin.f32 %v631_v48, 1.0  ;;  %1053 = vrcp.f32 %v571_v49 }
  0xc0   : > { %v600_v41 = vmul.f32 1.2, %v1044_v51  ;;  %v494_v53 = vadd.f32 %v462_v46, %v396_v50 }
  0xc1   : > { %663 = vst [vmem:[%s1498_s28 + $0x40] sm:$0xff] %v647_v52 }
  0xc2   : > { %v1046_v22 = vpop.eup %1045  ;;  %v616_v55 = vadd.f32 -0.1, %v600_v41  ;;  %v510_v56 = vmul.f32 1.5, %v494_v53 }
  0xc3   : > { %v601_v14 = vmul.f32 1.2, %v1046_v22 }
  0xc4   : > { %v1048_v57 = vpop.eup %1047  ;;  %v632_v1 = vmax.f32 %v616_v55, 0.0  ;;  %v526_v32 = vsub.f32 0.0, %v510_v56 }
  0xc5   : > { %v1050_v44 = vpop.eup %1049  ;;  %v617_v58 = vadd.f32 -0.1, %v601_v14  ;;  %v602_v59 = vmul.f32 1.2, %v1048_v57 }
  0xc6   : > { %v648_v60 = vmin.f32 %v632_v1, 1.0  ;;  %v572_v61 = vadd.f32 1.0, %v1050_v44  ;;  %v557_v63 = vmul.f32 1.442695, %v526_v32 }
  0xc7   : > { %v633_v2 = vmax.f32 %v617_v58, 0.0  ;;  %v618_v3 = vadd.f32 -0.1, %v602_v59 }
  0xc8   : > { %v1052_v4 = vpop.eup %1051  ;;  %664 = vst [vmem:[%s1498_s28 + $0x48] sm:$0xff] %v648_v60  ;;  %1055 = vrcp.f32 %v572_v61 }
  0xc9   : > { %v1054_v6 = vpop.eup %1053  ;;  %v649_v28 = vmin.f32 %v633_v2, 1.0  ;;  %v634_v7 = vmax.f32 %v618_v3, 0.0  ;;  %v573_v8 = vadd.f32 1.0, %v1052_v4  ;;  %1057 = vpow2.f32 %v557_v63 }
  0xca   : > { %v603_v9 = vmul.f32 1.2, %v1054_v6 }
  0xcb   : > { %665 = vst [vmem:[%s1498_s28 + $0x50] sm:$0xff] %v649_v28  ;;  %v650_v10 = vmin.f32 %v634_v7, 1.0  ;;  %1059 = vrcp.f32 %v573_v8 }
  0xcc   : > { %v619_v23 = vadd.f32 -0.1, %v603_v9 }
  0xcd   : > { %666 = vst [vmem:[%s1498_s28 + $0x58] sm:$0xff] %v650_v10 }
  0xce   : > { %v635_v11 = vmax.f32 %v619_v23, 0.0 }
  0xd0   : > { %v651_v45 = vmin.f32 %v635_v11, 1.0 }
  0xd2   : > { %v1056_v12 = vpop.eup %1055  ;;  %667 = vst [vmem:[%s1498_s28 + $0x60] sm:$0xff] %v651_v45 }
  0xd3   : > { %v1058_v13 = vpop.eup %1057  ;;  %v604_v0 = vmul.f32 1.2, %v1056_v12 }
  0xd4   : > { %v574_v15 = vadd.f32 1.0, %v1058_v13 }
  0xd5   : > { %v1060_v16 = vpop.eup %1059  ;;  %v620_v17 = vadd.f32 -0.1, %v604_v0 }
  0xd6   : > { %v605_v18 = vmul.f32 1.2, %v1060_v16  ;;  %1061 = vrcp.f32 %v574_v15 }
  0xd7   : > { %v636_v54 = vmax.f32 %v620_v17, 0.0 }
  0xd8   : > { %v621_v21 = vadd.f32 -0.1, %v605_v18 }
  0xd9   : > { %v652_v24 = vmin.f32 %v636_v54, 1.0 }
  0xda   : > { %v637_v26 = vmax.f32 %v621_v21, 0.0 }
  0xdb   : > { %668 = vst [vmem:[%s1498_s28 + $0x68] sm:$0xff] %v652_v24 }
  0xdc   : > { %v653_v19 = vmin.f32 %v637_v26, 1.0 }
  0xde   : > { %669 = vst [vmem:[%s1498_s28 + $0x70] sm:$0xff] %v653_v19 }
  0xe0   : > { %v1062_v25 = vpop.eup %1061 }
  0xe1   : > { %v606_v29 = vmul.f32 1.2, %v1062_v25 }
  0xe3   : > { %v622_v30 = vadd.f32 -0.1, %v606_v29  ;;  %683 = sbr.rel (!%p1631_p8) target bundleno = 261 (0x105), region = 40 }
  0xe5   : > { %v638_v62 = vmax.f32 %v622_v30, 0.0 }
  0xe7   : > { %v654_v31 = vmin.f32 %v638_v62, 1.0 }
  0xe9   : > { %670 = vst [vmem:[%s1498_s28 + $0x78] sm:$0xff] %v654_v31 }
  0xea   : > { %s1644_s8 = smov (!%p686_p12, %s685_s8), 16 }
  0xeb   : > { %s1527_s9 = sshll.u32 %s1644_s8, 7 }
  0xec   : > { %s690_s17 = ssub.s32 2048, %s1527_s9 }
  0xed   : > { %691 = vsyncadd %s672_s4, %s690_s17  ;;  %p869_p0 = scmp.ne.s32.totalorder %s1527_s9, 0  ;;  %s881_s19 = sshll.u32 %s1268_s16, 11 }
  0xee   : > { %s1537_s5 = scalar_lea.hbm %s1620_s2, %s881_s19  ;;  %s697_s10 = sshll.u32 %s1498_s28, 4  ;;  %s698_s10 = int_to_ptr.vmem [resolvable:$true] %s697_s10 }
  0xef   : > { %s1119_s29 = scalar_lea.vmem %s698_s10, %s1527_s9  ;;  %s1225_s20 = smov [#allocation7]  }
  0xf0   : > { %p1120_p1 = scmp.ne.s32.totalorder %s698_s10, %s1119_s29  ;;  %s1123_s27 = sshll.u32 %s1225_s20, 4  ;;  %s1124_s27 = int_to_ptr.vmem [resolvable:$false] %s1123_s27 }
  0xf1   : > { %s1125_s11 = scalar_lea.vmem %s1124_s27, 4096  ;;  %p1126_p10 = scmp.lt.s32.totalorder %s698_s10, %s1124_s27 }
  0xf2   : > { %p1121_p3 = pnand %p1120_p1, %p869_p0  ;;  %p1127_p6 = scmp.lt.s32.totalorder %s1125_s11, %s1119_s29 }
  0xf4   : > { %p1122_p11 = pneg %p1121_p3  ;;  %p1128_p9 = por %p1127_p6, %p1126_p10 }
  0xf6   : > { %p1129_p2 = pnand %p1128_p9, %p1122_p11 }
  0xf8   : > { %1132 = shalt.err (!%p1129_p2)
}
  0xf9   : > { %s1133_s28 = scalar_lea.hbm %s1537_s5, %s1527_s9  ;;  %s1137_s17 = scalar_lea.hbm %s1620_s2, 2560 }
  0xfa   : > { %p1134_p13 = scmp.ne.s32.totalorder %s1537_s5, %s1133_s28  ;;  %p1138_p5 = scmp.lt.u32.totalorder %s1537_s5, %s1620_s2 }
  0xfb   : > { %p1139_p8 = scmp.lt.u32.totalorder %s1137_s17, %s1133_s28  ;;  %p1141_p1 = scmp.lt.u32.totalorder %s1133_s28, %s1537_s5 }
  0xfc   : > { %p1135_p4 = pnand %p1134_p13, %p869_p0 }
  0xfd   : > { %p1140_p12 = por %p1139_p8, %p1138_p5 }
  0xfe   : > { %p1136_p7 = pneg %p1135_p4 }
  0xff   : > { %p1142_p3 = por %p1141_p1, %p1140_p12 }
 0x101   : > { %p1143_p11 = pnand %p1142_p3, %p1136_p7 }
 0x103   : > { %1146 = shalt.err (!%p1143_p11)
}
 0x104   : > { %700 = dma.vmem_to_hbm [thread:$0]  (%p869_p0), %s698_s10, %s1527_s9, %s1537_s5, %s672_s4  }
 0x105 PF: > { %p1632_p10 = scmp.ne.s32.totalorder %s1627_s24, 0 }
 0x106   : > { %s873_s30 = sshll.u32 (%p1632_p10), %s1268_s16, 4 }
 0x107   : > { %703 = sbr.rel (!%p1632_p10) target bundleno = 297 (0x129), region = 44  ;;  %s705_s29 = ssub.s32 (%p1632_p10), 20, %s873_s30 }
 0x108   : > { %p706_p6 = scmp.lt.s32.totalorder (%p1632_p10), %s705_s29, 16 }
 0x10e   : > { %s1646_s29 = smov (!%p706_p6, %s705_s29), 16 }
 0x10f   : > { %s1565_s20 = sshll.u32 %s1646_s29, 4 }
 0x110   : > { %s710_s27 = ssub.s32 256, %s1565_s20 }
 0x111   : > { %711 = vsyncadd %s677_s6, %s710_s27  ;;  %p875_p0 = scmp.ne.s32.totalorder %s1565_s20, 0  ;;  %s882_s24 = sshll.u32 %s1268_s16, 8 }
 0x112   : > { %s1575_s5 = scalar_lea.hbm %s1621_s3, %s882_s24  ;;  %s716_s10 = sshll.u32 %s1470_s23, 4  ;;  %s717_s10 = int_to_ptr.vmem [resolvable:$true] %s716_s10 }
 0x113   : > { %s1147_s11 = scalar_lea.vmem %s717_s10, %s1565_s20  ;;  %s1226_s28 = smov [#allocation8]  }
 0x114   : > { %p1148_p9 = scmp.ne.s32.totalorder %s717_s10, %s1147_s11  ;;  %s1151_s7 = sshll.u32 %s1226_s28, 4  ;;  %s1152_s7 = int_to_ptr.vmem [resolvable:$false] %s1151_s7 }
 0x115   : > { %s1153_s8 = scalar_lea.vmem %s1152_s7, 512  ;;  %p1154_p4 = scmp.lt.s32.totalorder %s717_s10, %s1152_s7 }
 0x116   : > { %p1149_p2 = pnand %p1148_p9, %p875_p0  ;;  %p1155_p7 = scmp.lt.s32.totalorder %s1153_s8, %s1147_s11 }
 0x118   : > { %p1150_p13 = pneg %p1149_p2  ;;  %p1156_p5 = por %p1155_p7, %p1154_p4 }
 0x11a   : > { %p1157_p8 = pnand %p1156_p5, %p1150_p13 }
 0x11c   : > { %1160 = shalt.err (!%p1157_p8)
}
 0x11d   : > { %s1161_s16 = scalar_lea.hbm %s1575_s5, %s1565_s20  ;;  %s1165_s19 = scalar_lea.hbm %s1621_s3, 320 }
 0x11e   : > { %p1162_p12 = scmp.ne.s32.totalorder %s1575_s5, %s1161_s16  ;;  %p1166_p11 = scmp.lt.u32.totalorder %s1575_s5, %s1621_s3 }
 0x11f   : > { %p1167_p10 = scmp.lt.u32.totalorder %s1165_s19, %s1161_s16  ;;  %p1169_p9 = scmp.lt.u32.totalorder %s1161_s16, %s1575_s5 }
 0x120   : > { %p1163_p1 = pnand %p1162_p12, %p875_p0 }
 0x121   : > { %p1168_p6 = por %p1167_p10, %p1166_p11 }
 0x122   : > { %p1164_p3 = pneg %p1163_p1 }
 0x123   : > { %p1170_p2 = por %p1169_p9, %p1168_p6 }
 0x125   : > { %p1171_p13 = pnand %p1170_p2, %p1164_p3 }
 0x127   : > { %1174 = shalt.err (!%p1171_p13)
}
 0x128   : > { %719 = dma.vmem_to_hbm [thread:$0]  (%p875_p0), %s717_s10, %s1565_s20, %s1575_s5, %s677_s6  }
 0x129 PF: > { %s728_s29 = sand.u32 1, %s1209_s12   ;;  %p1633_p4 = scmp.ne.s32.totalorder %s1628_s25, 0 }
 0x12a   : > { %p1634_p7 = scmp.ge.s32.totalorder %s1221_s15, 2  ;;  %s729_s27 = scalar_lea.sflag [#allocation4], %s728_s29 }
 0x12c   : > { %p888_p5 = pnand %p1634_p7, %p1633_p4 }
 0x12e   : > { %1200 = dma.done.wait (!%p888_p5), %s729_s27, 2048  }
 0x12f   : > { %1202 = vsyncadd (!%p888_p5), %s729_s27, 4294965248  ;;  %s738_s24 = scalar_lea.sflag [#allocation9], %s728_s29 }
 0x130   : > { %1204 = dma.done.wait (!%p888_p5), %s738_s24, 256  }
 0x131   : > { %1206 = vsyncadd (!%p888_p5), %s738_s24, 4294967040  ;;  %p23_p0 = scmp.ge.s32.totalorder %s1272_s18, 4   ;;  %s1635_s12 = smov %s1213_s13 }
 0x132   : > { %s1636_s13 = smov %s1217_s14  ;;  %s1637_s14 = smov %s1284_s21 }
 0x133   : > { %s1638_s15 = smov %s1272_s18  ;;  %25 = sbr.rel (!%p23_p0) target bundleno = 9 (0x9), region = 103 }
 0x13a   :  { %743 = vsyncpa [#allocation3], 1 }
 0x13b   :  { %745 = vsyncpa [#allocation3 + $0x1], 1 }
 0x13c   :  { %746 = vsyncpa [#allocation6], 1 }
 0x13d   :  { %748 = vsyncpa [#allocation6 + $0x1], 1 }
 0x13e   :  { %749 = vsyncpa [#allocation4], 1 }
 0x13f   :  { %751 = vsyncpa [#allocation4 + $0x1], 1 }
 0x140   :  { %752 = vsyncpa [#allocation9], 1 }
 0x141   :  { %754 = vsyncpa [#allocation9 + $0x1], 1 }

</bundles_post_ra>
